<compile_context>
chip_gen: v7x
topology: tpu7x:2x2x1
jax: 0.10.0
libtpu: 0.0.40
codegen_flags: <defaults>
</compile_context>

<pallas_src>
import jax
import jax.numpy as jnp
from jax.experimental import pallas as pl
from jax.experimental.pallas import tpu as pltpu


def _round_up(x, m):
    return ((x + m - 1) // m) * m


def qnet_kernel(x_ref, w1_ref, b1_ref, w2_ref, b2_ref, o_ref):
    # In-kernel cast of x to the MXU input dtype (no-op for f32 params);
    # avoids a separate XLA cast pass over x in HBM.
    x = x_ref[...].astype(w1_ref.dtype)

    # layer 1: x @ W1 on the MXU, f32 accumulation; bias + ReLU in f32 on the VPU
    h = jnp.dot(x, w1_ref[...], preferred_element_type=jnp.float32)
    h = jnp.maximum(h + b1_ref[...], 0.0)

    # layer 2: deliberate cast of the f32 activations to the MXU input dtype
    # (no-op for f32 params; only narrows when bf16 mixed precision is used).
    h = h.astype(w2_ref.dtype)
    out = jnp.dot(h, w2_ref[...], preferred_element_type=jnp.float32)

    # Narrow store: only the true out_size columns are written to HBM.
    # The 128-lane-padded dot result never leaves VMEM.
    n = o_ref.shape[-1]
    o_ref[...] = (out[:, :n] + b2_ref[...]).astype(o_ref.dtype)


def prepare_params(w1, b1, w2, b2, *, compute_dtype=jnp.bfloat16):
    """One-time padding / casting of the parameters (hoisted out of the
    per-call forward path).

    w1: (in, hidden), b1: (1, hidden), w2: (hidden, out), b2: (1, out).
    Returns (w1p, b1p, w2p, b2f):
      w1p: (in, hidden_p)        in compute dtype (hidden padded to 128 lanes)
      b1p: (1, hidden_p)         f32
      w2p: (hidden_p, out_p)     in compute dtype (out padded to 128 lanes,
                                 MXU operand only -- never written to HBM wide)
      b2f: (1, out)              f32 (unpadded; its width encodes true out_size)
    Zero padding is mathematically exact.
    """
    in_size, hidden = w1.shape
    out_size = w2.shape[1]
    hidden_p = _round_up(hidden, 128)
    out_p = _round_up(out_size, 128)

    wdt = w1.dtype if compute_dtype is None else compute_dtype
    w1p = jnp.zeros((in_size, hidden_p), wdt).at[:, :hidden].set(w1.astype(wdt))
    b1p = jnp.zeros((1, hidden_p), jnp.float32).at[:, :hidden].set(
        b1.reshape(1, hidden).astype(jnp.float32))
    w2p = jnp.zeros((hidden_p, out_p), wdt).at[:hidden, :out_size].set(w2.astype(wdt))
    b2f = b2.reshape(1, out_size).astype(jnp.float32)
    return w1p, b1p, w2p, b2f


def linear_qnet_forward(x, params, *, block_b=1024, out_dtype=jnp.float32):
    """x: (B, in_size); params from prepare_params().  Returns (B, out_size)."""
    w1p, b1p, w2p, b2 = params
    B, in_size = x.shape
    assert w1p.shape[0] == in_size
    hidden_p = w1p.shape[1]
    out_p = w2p.shape[1]
    out_size = b2.shape[1]

    # Batch tile: sublane-aligned; ensure >=2 grid steps once B >= 16 so both
    # v7x TensorCores get work. Last block may be partial (rows independent,
    # OOB rows are never written back).
    bm = min(block_b, max(8, _round_up(pl.cdiv(B, 2), 8)))
    grid = (pl.cdiv(B, bm),)

    itemsize_x = jnp.dtype(x.dtype).itemsize
    itemsize_w = jnp.dtype(w1p.dtype).itemsize
    cost = pl.CostEstimate(
        flops=2 * B * in_size * hidden_p + 2 * B * hidden_p * out_p,
        transcendentals=0,
        bytes_accessed=(x.size * itemsize_x
                        + (w1p.size + w2p.size) * itemsize_w
                        + (b1p.size + b2.size) * 4
                        + B * out_size * jnp.dtype(out_dtype).itemsize),
    )

    return pl.pallas_call(
        qnet_kernel,
        out_shape=jax.ShapeDtypeStruct((B, out_size), out_dtype),
        grid=grid,
        in_specs=[
            pl.BlockSpec((bm, in_size), lambda i: (i, 0)),        # x: tiled over batch
            pl.BlockSpec((in_size, hidden_p), lambda i: (0, 0)),  # W1: VMEM-resident
            pl.BlockSpec((1, hidden_p), lambda i: (0, 0)),        # b1: VMEM-resident
            pl.BlockSpec((hidden_p, out_p), lambda i: (0, 0)),    # W2: VMEM-resident
            pl.BlockSpec((1, out_size), lambda i: (0, 0)),        # b2: VMEM-resident
        ],
        out_specs=pl.BlockSpec((bm, out_size), lambda i: (i, 0)),  # narrow HBM output
        compiler_params=pltpu.CompilerParams(
            dimension_semantics=("parallel",)),
        cost_estimate=cost,
    )(x, w1p, b1p, w2p, b2)


def init_params(key, input_size, hidden_size, output_size, dtype=jnp.float32):
    """Deterministic init mimicking nn.Linear's uniform(-1/sqrt(fan_in), 1/sqrt(fan_in))."""
    k1, k2, k3, k4 = jax.random.split(key, 4)
    bound1 = 1.0 / (input_size ** 0.5)
    bound2 = 1.0 / (hidden_size ** 0.5)
    w1 = jax.random.uniform(k1, (input_size, hidden_size), dtype, -bound1, bound1)
    b1 = jax.random.uniform(k2, (1, hidden_size), dtype, -bound1, bound1)
    w2 = jax.random.uniform(k3, (hidden_size, output_size), dtype, -bound2, bound2)
    b2 = jax.random.uniform(k4, (1, output_size), dtype, -bound2, bound2)
    return w1, b1, w2, b2


if __name__ == "__main__":
    # Snake-DQN-like sizes (kept small): state=11, hidden=32, actions=3
    input_size, hidden_size, output_size = 11, 32, 3

    key = jax.random.PRNGKey(0)
    kx, kx2, kp = jax.random.split(key, 3)
    w1, b1, w2, b2 = init_params(kp, input_size, hidden_size, output_size)

    def ref_fwd(xx):
        return jnp.maximum(xx @ w1 + b1, 0.0) @ w2 + b2

    # Pre-pad / pre-cast params ONCE (f32 path and default bf16-MXU path).
    params_f32 = prepare_params(w1, b1, w2, b2, compute_dtype=None)
    params_bf16 = prepare_params(w1, b1, w2, b2)  # default: bf16 MXU inputs

    # --- batch=8 (divisible tile) ---
    x = jax.random.normal(kx, (8, input_size), jnp.float32)
    out = jax.block_until_ready(linear_qnet_forward(x, params_f32))
    assert out.shape == (8, output_size)
    assert jnp.allclose(out, ref_fwd(x), atol=1e-5, rtol=1e-5)

    out_bf16 = jax.block_until_ready(linear_qnet_forward(x, params_bf16))
    assert out_bf16.shape == (8, output_size)
    assert jnp.allclose(out_bf16, ref_fwd(x), atol=5e-2, rtol=5e-2)

    # --- batch=20 (exercises partial last block + 2-step grid) ---
    x2 = jax.random.normal(kx2, (20, input_size), jnp.float32)
    out2 = jax.block_until_ready(linear_qnet_forward(x2, params_f32))
    assert out2.shape == (20, output_size)
    assert jnp.allclose(out2, ref_fwd(x2), atol=1e-5, rtol=1e-5)

    out2_bf16 = jax.block_until_ready(linear_qnet_forward(x2, params_bf16))
    assert jnp.allclose(out2_bf16, ref_fwd(x2), atol=5e-2, rtol=5e-2)

    print("KERNEL_OK")
</pallas_src>

<mosaic_0001>
module attributes {stable_mosaic.version = 11 : i64} {
  func.func @qnet_kernel(%arg0: i32, %arg1: memref<8x11xf32, #tpu.memory_space<vmem>>, %arg2: memref<11x128xf32, #tpu.memory_space<vmem>>, %arg3: memref<1x128xf32, #tpu.memory_space<vmem>>, %arg4: memref<128x128xf32, #tpu.memory_space<vmem>>, %arg5: memref<1x3xf32, #tpu.memory_space<vmem>>, %arg6: memref<8x3xf32, #tpu.memory_space<vmem>>) attributes {dimension_semantics = [#tpu.dimension_semantics<parallel>], iteration_bounds = array<i64: 1>, scalar_prefetch = 0 : i64, scratch_operands = 0 : i64, tpu.core_type = #tpu.core_type<tc>, window_params = [{transform_indices = @transform_0, window_bounds = array<i64: 8, 11>}, {pipeline_mode = #tpu.pipeline_mode<synchronous>, transform_indices = @transform_1, window_bounds = array<i64: 11, 128>}, {pipeline_mode = #tpu.pipeline_mode<synchronous>, transform_indices = @transform_2, window_bounds = array<i64: 1, 128>}, {pipeline_mode = #tpu.pipeline_mode<synchronous>, transform_indices = @transform_3, window_bounds = array<i64: 128, 128>}, {pipeline_mode = #tpu.pipeline_mode<synchronous>, transform_indices = @transform_4, window_bounds = array<i64: 1, 3>}, {transform_indices = @transform_5, window_bounds = array<i64: 8, 3>}]} {
    %c0 = arith.constant 0 : index
    %c0_0 = arith.constant 0 : index
    %0 = vector.load %arg1[%c0, %c0_0] : memref<8x11xf32, #tpu.memory_space<vmem>>, vector<8x11xf32>
    %c0_1 = arith.constant 0 : index
    %c0_2 = arith.constant 0 : index
    %1 = vector.load %arg2[%c0_1, %c0_2] : memref<11x128xf32, #tpu.memory_space<vmem>>, vector<11x128xf32>
    %cst = arith.constant dense<0.000000e+00> : vector<8x128xf32>
    %2 = tpu.matmul %0, %1, %cst {dimension_numbers = #tpu.dot_dimension_numbers<[1], [0], [0], [1], [0, 0, 1, 1], [], []>} : vector<8x11xf32>, vector<11x128xf32>, vector<8x128xf32> -> vector<8x128xf32>
    %c0_3 = arith.constant 0 : index
    %c0_4 = arith.constant 0 : index
    %3 = vector.load %arg3[%c0_3, %c0_4] : memref<1x128xf32, #tpu.memory_space<vmem>>, vector<1x128xf32>
    %4 = vector.broadcast %3 : vector<1x128xf32> to vector<8x128xf32>
    %5 = arith.addf %2, %4 : vector<8x128xf32>
    %cst_5 = arith.constant 0.000000e+00 : f32
    %6 = vector.broadcast %cst_5 : f32 to vector<8x128xf32>
    %7 = arith.maximumf %5, %6 : vector<8x128xf32>
    %c0_6 = arith.constant 0 : index
    %c0_7 = arith.constant 0 : index
    %8 = vector.load %arg4[%c0_6, %c0_7] : memref<128x128xf32, #tpu.memory_space<vmem>>, vector<128x128xf32>
    %cst_8 = arith.constant dense<0.000000e+00> : vector<8x128xf32>
    %9 = tpu.matmul %7, %8, %cst_8 {dimension_numbers = #tpu.dot_dimension_numbers<[1], [0], [0], [1], [0, 0, 1, 1], [], []>} : vector<8x128xf32>, vector<128x128xf32>, vector<8x128xf32> -> vector<8x128xf32>
    %10 = vector.extract_strided_slice %9 {offsets = [0, 0], sizes = [8, 3], strides = [1, 1]} : vector<8x128xf32> to vector<8x3xf32>
    %c0_9 = arith.constant 0 : index
    %c0_10 = arith.constant 0 : index
    %11 = vector.load %arg5[%c0_9, %c0_10] : memref<1x3xf32, #tpu.memory_space<vmem>>, vector<1x3xf32>
    %12 = vector.broadcast %11 : vector<1x3xf32> to vector<8x3xf32>
    %13 = arith.addf %10, %12 : vector<8x3xf32>
    %c0_11 = arith.constant 0 : index
    %c0_12 = arith.constant 0 : index
    %14 = vector.load %arg6[%c0_11, %c0_12] : memref<8x3xf32, #tpu.memory_space<vmem>>, vector<8x3xf32>
    tpu.vector_store %arg6[%c0_11, %c0_12], %13 {strides = array<i32>} : memref<8x3xf32, #tpu.memory_space<vmem>>, vector<8x3xf32>,
    return
  }
  func.func @transform_0(%arg0: i32) -> (i32, i32) {
    %c0_i32 = arith.constant 0 : i32
    %c0_i32_0 = arith.constant 0 : i32
    return %arg0, %c0_i32 : i32, i32
  }
  func.func @transform_1(%arg0: i32) -> (i32, i32) {
    %c0_i32 = arith.constant 0 : i32
    %c0_i32_0 = arith.constant 0 : i32
    %c0_i32_1 = arith.constant 0 : i32
    return %c0_i32, %c0_i32_0 : i32, i32
  }
  func.func @transform_2(%arg0: i32) -> (i32, i32) {
    %c0_i32 = arith.constant 0 : i32
    %c0_i32_0 = arith.constant 0 : i32
    %c0_i32_1 = arith.constant 0 : i32
    return %c0_i32, %c0_i32_0 : i32, i32
  }
  func.func @transform_3(%arg0: i32) -> (i32, i32) {
    %c0_i32 = arith.constant 0 : i32
    %c0_i32_0 = arith.constant 0 : i32
    %c0_i32_1 = arith.constant 0 : i32
    return %c0_i32, %c0_i32_0 : i32, i32
  }
  func.func @transform_4(%arg0: i32) -> (i32, i32) {
    %c0_i32 = arith.constant 0 : i32
    %c0_i32_0 = arith.constant 0 : i32
    %c0_i32_1 = arith.constant 0 : i32
    return %c0_i32, %c0_i32_0 : i32, i32
  }
  func.func @transform_5(%arg0: i32) -> (i32, i32) {
    %c0_i32 = arith.constant 0 : i32
    %c0_i32_0 = arith.constant 0 : i32
    return %arg0, %c0_i32 : i32, i32
  }
}

</mosaic_0001>

<bundles_post_ra>
// kernel: tpu_custom_call.1
= control target key start
LH: loop header
LB: loop body
LE: loop exit
PB: predicated region body
PF: predicated region fallthrough
CT: control target
= control target key end

     0   :  { %10 = vsyncpa [#allocation3], 0  ;;  %s513_s0 = inlined_call_operand.hbm [shape: f32[8,11], index: 0, kind: input, shape index: {}]   ;;  %s514_s1 = inlined_call_operand.hbm [shape: f32[11,128], index: 1, kind: input, shape index: {}]   ;;  %s515_s2 = inlined_call_operand.vmem [shape: f32[1,128], index: 2, kind: input, shape index: {}]   ;;  %s516_s3 = inlined_call_operand.hbm [shape: f32[128,128], index: 3, kind: input, shape index: {}]   ;;  %s517_s4 = inlined_call_operand.vmem [shape: f32[1,3], index: 4, kind: input, shape index: {}]   ;;  %s518_s5 = inlined_call_operand.vmem [shape: f32[8,3], index: 5, kind: output, shape index: {}]  }
   0x1   :  { %11 = vsyncpa [#allocation5], 0  ;;  %s423_s18 = smov [#allocation4]   ;;  %s353_s22 = scalar_lea.hbm %s514_s1, 256 }
   0x2   :  { %s27_s19 = sshll.u32 %s423_s18, 4  ;;  %p354_p0 = scmp.ne.s32.totalorder %s514_s1, %s353_s22  ;;  %s28_s19 = int_to_ptr.vmem [resolvable:$true] %s27_s19 }
   0x3   :  { %p357_p1 = scmp.lt.u32.totalorder %s353_s22, %s514_s1 }
   0x5   :  { %p359_p2 = pnand %p357_p1, %p354_p0 }
   0x7   :  { %362 = shalt.err (!%p359_p2)
}
   0x8   :  { %s363_s27 = scalar_lea.vmem %s28_s19, 256  ;;  %p368_p4 = scmp.lt.s32.totalorder %s28_s19, %s28_s19 }
   0x9   :  { %p364_p3 = scmp.ne.s32.totalorder %s28_s19, %s363_s27  ;;  %p369_p5 = scmp.lt.s32.totalorder %s363_s27, %s363_s27 }
   0xb   :  { %p370_p6 = por %p369_p5, %p368_p4 }
   0xd   :  { %p371_p7 = pnand %p370_p6, %p364_p3 }
   0xf   :  { %374 = shalt.err (!%p371_p7)
}
  0x10   :  { %s424_s28 = smov 128   ;;  %s425_s29 = smov 8  }
  0x11   :  { %33 = dma.hbm_to_vmem [thread:$0]  %s514_s1, 256, %s28_s19, [#allocation5], %s424_s28, %s424_s28, %s425_s29  }
  0x12   :  { %s426_s7 = smov [#allocation2]   ;;  %s427_s9 = smov [#allocation6]  }
  0x13   :  { %s18_s8 = sshll.u32 %s426_s7, 4  ;;  %s41_s10 = sshll.u32 %s427_s9, 4  ;;  %s19_s8 = int_to_ptr.vmem [resolvable:$true] %s18_s8  ;;  %s42_s10 = int_to_ptr.vmem [resolvable:$true] %s41_s10 }
  0x14   :  { %s375_s13 = scalar_lea.hbm %s513_s0, 128 }
  0x15   :  { %p376_p8 = scmp.ne.s32.totalorder %s513_s0, %s375_s13  ;;  %p379_p9 = scmp.lt.u32.totalorder %s375_s13, %s513_s0 }
  0x17   :  { %p381_p10 = pnand %p379_p9, %p376_p8 }
  0x19   :  { %384 = shalt.err (!%p381_p10)
}
  0x1a   :  { %s385_s1 = scalar_lea.vmem %s19_s8, 128  ;;  %p390_p12 = scmp.lt.s32.totalorder %s19_s8, %s19_s8 }
  0x1b   :  { %p386_p11 = scmp.ne.s32.totalorder %s19_s8, %s385_s1  ;;  %p391_p13 = scmp.lt.s32.totalorder %s385_s1, %s385_s1 }
  0x1d   :  { %p392_p0 = por %p391_p13, %p390_p12 }
  0x1f   :  { %p393_p1 = pnand %p392_p0, %p386_p11 }
  0x21   :  { %396 = shalt.err (!%p393_p1)
}
  0x22   :  { %21 = dma.hbm_to_vmem [thread:$0]  %s513_s0, 128, %s19_s8, [#allocation3]  }
  0x23   :  { %s397_s22 = scalar_lea.hbm %s516_s3, 2048 }
  0x24   :  { %p398_p2 = scmp.ne.s32.totalorder %s516_s3, %s397_s22  ;;  %p401_p3 = scmp.lt.u32.totalorder %s397_s22, %s516_s3 }
  0x26   :  { %p403_p4 = pnand %p401_p3, %p398_p2 }
  0x28   :  { %406 = shalt.err (!%p403_p4)
}
  0x29   :  { %s407_s27 = scalar_lea.vmem %s42_s10, 2048  ;;  %p412_p6 = scmp.lt.s32.totalorder %s42_s10, %s42_s10 }
  0x2a   :  { %p408_p5 = scmp.ne.s32.totalorder %s42_s10, %s407_s27  ;;  %p413_p7 = scmp.lt.s32.totalorder %s407_s27, %s407_s27 }
  0x2c   :  { %p414_p8 = por %p413_p7, %p412_p6 }
  0x2e   :  { %p415_p9 = pnand %p414_p8, %p408_p5 }
  0x30   :  { %418 = shalt.err (!%p415_p9)
}
  0x31   :  { %47 = dma.hbm_to_vmem [thread:$0]  %s516_s3, 2048, %s42_s10, [#allocation5], %s424_s28, %s424_s28, %s425_s29  }
  0x32   :  { %419 = dma.done.wait [#allocation3], 128  }
  0x33   :  { %420 = vsyncadd [#allocation3], 4294967168 }
  0x34   :  { %421 = dma.done.wait [#allocation5], 2304  }
  0x35   :  { %422 = vsyncadd [#allocation5], 4294964992  ;;  %v428_v0 = vmov 0.0|0.0   ;;  %vm429_vm0 = vmmov 0   ;;  %v430_v1 = vmov 0.0   ;;  %vm73_vm1 = vcmask 1042432  }
  0x36   :  { %316 = vmatprep.subr.bf16.mxu0 %v428_v0  ;;  %320 = vmatprep.subr.bf16.mxu1 %v428_v0  ;;  %v60_v2 = vld [vmem:[#allocation4] sm:$0xff]  ;;  %v61_v3 = vld [vmem:[#allocation4 + $0x8] sm:$0x7]  ;;  %vm431_vm2 = vmmov 1   ;;  %v148_v5 = vld [vmem:[#allocation6] sm:$0xff]  ;;  %vm69_vm4 = vcmask 89088  }
  0x37   :  { %278 = vmatprep.mubr.msk.f32.mxu0 %vm429_vm0, %v430_v1  ;;  %313 = vmatprep.mubr.msk.f32.mxu1 %vm429_vm0, %v430_v1  ;;  %vm318_vm3 = vmpackc.low %vm73_vm1, %vm431_vm2  ;;  %v317_v4 = vpack.c.bf16 %v61_v3, %v60_v2  ;;  %v149_v6 = vld [vmem:[#allocation6 + $0x8] sm:$0xff]  ;;  %v150_v7 = vld [vmem:[#allocation6 + $0x10] sm:$0xff]  ;;  %vm242_vm5 = vcmask 23552  }
  0x38   :  { %v321_v8 = vpack.c.bf16 %v149_v6, %v148_v5  ;;  %v151_v9 = vld [vmem:[#allocation6 + $0x18] sm:$0xff]  ;;  %v59_v10 = vld [vmem:[#allocation2] sm:$0xff]  ;;  %v152_v12 = vld [vmem:[#allocation6 + $0x20] sm:$0xff] }
  0x39   :  { %319 = vmatpush3.bf16.msk.msra.mxu0 %vm318_vm3, %v317_v4  ;;  %v324_v11 = vpack.c.bf16 %v151_v9, %v150_v7  ;;  %v153_v13 = vld [vmem:[#allocation6 + $0x28] sm:$0xff]  ;;  %v154_v15 = vld [vmem:[#allocation6 + $0x30] sm:$0xff]  ;;  %v155_v16 = vld [vmem:[#allocation6 + $0x38] sm:$0xff] }
  0x3a   :  { %322 = vmatpush3.bf16.msra.mxu1 %v321_v8  ;;  %v327_v14 = vpack.c.bf16 %v153_v13, %v152_v12  ;;  %v330_v17 = vpack.c.bf16 %v155_v16, %v154_v15  ;;  %v156_v18 = vld [vmem:[#allocation6 + $0x40] sm:$0xff]  ;;  %v157_v19 = vld [vmem:[#allocation6 + $0x48] sm:$0xff]  ;;  %v158_v21 = vld [vmem:[#allocation6 + $0x50] sm:$0xff] }
  0x3b   :  { %323 = vmatprep.subr.bf16.mxu1 %v428_v0  ;;  %v333_v20 = vpack.c.bf16 %v157_v19, %v156_v18  ;;  %v159_v22 = vld [vmem:[#allocation6 + $0x58] sm:$0xff]  ;;  %v160_v24 = vld [vmem:[#allocation6 + $0x60] sm:$0xff]  ;;  %v161_v25 = vld [vmem:[#allocation6 + $0x68] sm:$0xff] }
  0x3c   :  { %279 = vmatmul.mubr.msk.f32.vlgmr.msra.gmra.mrb[0].mxu0 %vm69_vm4, %v59_v10  ;;  %v336_v23 = vpack.c.bf16 %v159_v22, %v158_v21  ;;  %v339_v26 = vpack.c.bf16 %v161_v25, %v160_v24  ;;  %v162_v27 = vld [vmem:[#allocation6 + $0x70] sm:$0xff]  ;;  %v163_v28 = vld [vmem:[#allocation6 + $0x78] sm:$0xff]  ;;  %v250_v30 = vld [vmem:[%s515_s2] ss:$0 sm:$0xff] }
  0x3d   :  { %v342_v29 = vpack.c.bf16 %v163_v28, %v162_v27  ;;  %v253_v35 = vld [vmem:[%s517_s4] ss:$0 sm:$0xff] }
  0x3e   :  { %325 = vmatpush3.bf16.msra.mxu1 %v324_v11 }
  0x3f   :  { %326 = vmatprep.subr.bf16.mxu1 %v428_v0 }
  0x42   :  { %328 = vmatpush3.bf16.msra.mxu1 %v327_v14 }
  0x43   :  { %329 = vmatprep.subr.bf16.mxu1 %v428_v0 }
  0x46   :  { %331 = vmatpush3.bf16.msra.mxu1 %v330_v17 }
  0x47   :  { %332 = vmatprep.subr.bf16.mxu1 %v428_v0 }
  0x4a   :  { %334 = vmatpush3.bf16.msra.mxu1 %v333_v20 }
  0x4b   :  { %335 = vmatprep.subr.bf16.mxu1 %v428_v0 }
  0x4e   :  { %337 = vmatpush3.bf16.msra.mxu1 %v336_v23 }
  0x4f   :  { %338 = vmatprep.subr.bf16.mxu1 %v428_v0 }
  0x52   :  { %340 = vmatpush3.bf16.msra.mxu1 %v339_v26 }
  0x53   :  { %341 = vmatprep.subr.bf16.mxu1 %v428_v0 }
  0x56   :  { %343 = vmatpush3.bf16.msra.mxu1 %v342_v29 }
 0x10f   :  { %v143_v31 = vpop.f32.mrb[0].mxu0 }
 0x110   :  { %v144_v32 = vadd.f32 %v250_v30, %v143_v31  ;;  %v280_v33 = vpop.f32.mrb[1].mxu0 }
 0x112   :  { %v147_v34 = vmax.f32 %v144_v32, 0.0 }
 0x114   :  { %314 = vmatmul.mubr.f32.vlgmr.msra.gmra.mrb[0].mxu1 %v147_v34 }
 0x1e7   :  { %v230_v36 = vpop.f32.mrb[0].mxu1 }
 0x1e8   :  { %v241_v37 = vadd.f32 %v253_v35, %v230_v36  ;;  %v315_v38 = vpop.f32.mrb[1].mxu1 }
 0x1ea   :  { %243 = vst.msk [vmem:[%s518_s5] sm:$0xff] %vm242_vm5, %v241_v37 }
 0x1eb   :  { %248 = vsyncpa [#allocation3], 1 }
 0x1ec   :  { %249 = vsyncpa [#allocation5], 1 }

</bundles_post_ra>
